<compile_context>
chip_gen: v7x
topology: tpu7x:2x2x1
jax: 0.10.0
libtpu: 0.0.40
codegen_flags: <defaults>
</compile_context>

<pallas_src>
import functools

import jax
import jax.numpy as jnp
import numpy as np
from jax import lax
from jax.experimental import pallas as pl
from jax.experimental.pallas import tpu as pltpu

BN_EPS = 1e-5
LEAKY_SLOPE = 0.2


def _round_up(x, m):
    return ((x + m - 1) // m) * m


def _pick_vmem_limit():
    """Generation-aware scoped-VMEM budget (leave headroom below physical)."""
    cap = 64 * 1024 * 1024  # conservative fallback (v7x per-TC physical)
    try:
        info = pltpu.get_tpu_info()
        cap = int(getattr(info, "vmem_capacity_bytes", cap))
    except Exception:
        pass
    return max(16 * 1024 * 1024, min(cap * 3 // 4, 96 * 1024 * 1024))


# --------------------------------------------------------------------------
# Pass 1 (resident-weight variant): conv-as-matmul + per-M-tile BN partials.
# No scratch: jnp.dot's f32 result is the accumulator; y stored bf16.
# --------------------------------------------------------------------------
def conv_stats_resident_kernel(xcol_ref, w_ref, y_ref, stats_ref):
    acc = jnp.dot(xcol_ref[...], w_ref[...], preferred_element_type=jnp.float32)
    yb = acc.astype(y_ref.dtype)
    y_ref[...] = yb
    y32 = yb.astype(jnp.float32)
    stats_ref[0, 0:1, :] = jnp.sum(y32, axis=0, keepdims=True)
    stats_ref[0, 1:2, :] = jnp.sum(y32 * y32, axis=0, keepdims=True)


# --------------------------------------------------------------------------
# Pass 1 (K-tiled fallback for large K): f32 VMEM accumulator is required
# because the y output is stored in bf16 (can't accumulate into it in f32).
# --------------------------------------------------------------------------
def conv_stats_ktiled_kernel(xcol_ref, w_ref, y_ref, stats_ref, acc_ref):
    k = pl.program_id(1)

    @pl.when(k == 0)
    def _():
        acc_ref[...] = jnp.zeros_like(acc_ref)

    acc_ref[...] += jnp.dot(xcol_ref[...], w_ref[...],
                            preferred_element_type=jnp.float32)

    @pl.when(k == pl.num_programs(1) - 1)
    def _():
        yb = acc_ref[...].astype(y_ref.dtype)
        y_ref[...] = yb
        y32 = yb.astype(jnp.float32)
        stats_ref[0, 0:1, :] = jnp.sum(y32, axis=0, keepdims=True)
        stats_ref[0, 1:2, :] = jnp.sum(y32 * y32, axis=0, keepdims=True)


# --------------------------------------------------------------------------
# Pass 2: normalize + affine + LeakyReLU, emitted channels-major [C_pad, tile_m]
# (XLU transpose inside the kernel; that slot is idle in this memory-bound pass).
# --------------------------------------------------------------------------
def bn_lrelu_kernel(y_ref, scale_ref, shift_ref, o_ref):
    y_hat = y_ref[...].astype(jnp.float32) * scale_ref[...] + shift_ref[...]
    y_hat = jnp.where(y_hat >= 0, y_hat, LEAKY_SLOPE * y_hat)
    o_ref[...] = jnp.transpose(y_hat).astype(o_ref.dtype)


# --------------------------------------------------------------------------
# Wrapper
# --------------------------------------------------------------------------
def im2col(x, ksz, st, pad):
    """x: [N, C, H, W] -> cols [N*OH*OW, C*ksz*ksz] (C-major column ordering,
    matching weight.reshape(C_out, C_in*ksz*ksz))."""
    N, C, H, W = x.shape
    xp = jnp.pad(x, ((0, 0), (0, 0), (pad, pad), (pad, pad)))
    OH = (H + 2 * pad - ksz) // st + 1
    OW = (W + 2 * pad - ksz) // st + 1
    patches = []
    for i in range(ksz):
        for j in range(ksz):
            patches.append(xp[:, :, i:i + st * OH:st, j:j + st * OW:st])
    col = jnp.stack(patches, axis=2).reshape(N, C * ksz * ksz, OH, OW)
    col = col.transpose(0, 2, 3, 1).reshape(N * OH * OW, C * ksz * ksz)
    return col, OH, OW


@functools.partial(jax.jit, static_argnames=("ksz", "st", "pad"))
def downsample_block(x, weight, gamma, beta, *, ksz, st, pad):
    """x: [N, C_in, H, W] NCHW; weight: [C_out, C_in, ksz, ksz] OIHW."""
    N, C_in, H, W = x.shape
    C_out = weight.shape[0]

    vmem_limit = _pick_vmem_limit()
    budget = int(vmem_limit * 0.6)

    # bf16 before im2col halves the materialized column HBM traffic.
    xcol, OH, OW = im2col(x.astype(jnp.bfloat16), ksz, st, pad)   # [M, K] bf16
    M, K = xcol.shape
    w2d = weight.reshape(C_out, C_in * ksz * ksz).T.astype(jnp.bfloat16)  # [K, C_out]

    # ---- padded / tiled geometry --------------------------------------
    C_pad = _round_up(C_out, 128)
    K_pad = _round_up(K, 128)

    # Weight-resident when the full [K_pad, C_pad] bf16 weight fits comfortably.
    resident = (K_pad * C_pad * 2) * 2 <= budget // 2
    if resident:
        tile_k = K_pad
    else:
        tile_k = min(1024, K_pad)
        K_pad = _round_up(K_pad, tile_k)
    gk = K_pad // tile_k

    # tile_m: multiple of 128 (lane-dense channels-major pass-2 output), cap 1024.
    tile_m = min(1024, _round_up(M, 128))

    def _p1_bytes(tm):
        xb = tm * tile_k * 2 * 2                       # xcol block, double-buffered
        wb = tile_k * C_pad * 2 * (1 if resident else 2)
        yb = tm * C_pad * 2 * 2                        # bf16 y block
        ab = 0 if resident else tm * C_pad * 4         # f32 accumulator scratch
        return xb + wb + yb + ab

    def _p2_bytes(tm):
        return tm * C_pad * 2 * 2 + C_pad * tm * 4 * 2 + 4 * C_pad * 4

    while tile_m > 128 and max(_p1_bytes(tile_m), _p2_bytes(tile_m)) > budget:
        tile_m -= 128

    # Give the "parallel" M axis at least 2 tiles when M is large enough so
    # both v7x TensorCores get work.
    M_pad = _round_up(M, tile_m)
    if M_pad // tile_m < 2 and M > 256:
        tile_m = _round_up((M + 1) // 2, 128)
        M_pad = _round_up(M, tile_m)
    gm = M_pad // tile_m

    # Zero-padded operands (zero rows/cols are exact no-ops for the matmul and
    # contribute 0 to the BN sums; stats divide by the true M).
    xcol_p = jnp.pad(xcol, ((0, M_pad - M), (0, K_pad - K)))
    w_p = jnp.pad(w2d, ((0, K_pad - K), (0, C_pad - C_out)))

    # ---- pass 1: conv + BN partial sums --------------------------------
    if gk == 1:
        kernel = conv_stats_resident_kernel
        grid = (gm,)
        in_specs = [
            pl.BlockSpec((tile_m, K_pad), lambda i: (i, 0)),
            pl.BlockSpec((K_pad, C_pad), lambda i: (0, 0)),   # constant -> DMA'd once
        ]
        out_specs = (
            pl.BlockSpec((tile_m, C_pad), lambda i: (i, 0)),
            pl.BlockSpec((1, 2, C_pad), lambda i: (i, 0, 0)),
        )
        scratch = []
        dims = ("parallel",)
    else:
        kernel = conv_stats_ktiled_kernel
        grid = (gm, gk)
        in_specs = [
            pl.BlockSpec((tile_m, tile_k), lambda i, k: (i, k)),
            pl.BlockSpec((tile_k, C_pad), lambda i, k: (k, 0)),
        ]
        out_specs = (
            pl.BlockSpec((tile_m, C_pad), lambda i, k: (i, 0)),
            pl.BlockSpec((1, 2, C_pad), lambda i, k: (i, 0, 0)),
        )
        scratch = [pltpu.VMEM((tile_m, C_pad), jnp.float32)]
        dims = ("parallel", "arbitrary")

    y_flat, stats = pl.pallas_call(
        kernel,
        out_shape=(
            jax.ShapeDtypeStruct((M_pad, C_pad), jnp.bfloat16),
            jax.ShapeDtypeStruct((gm, 2, C_pad), jnp.float32),
        ),
        grid_spec=pltpu.PrefetchScalarGridSpec(
            num_scalar_prefetch=0,
            grid=grid,
            in_specs=in_specs,
            out_specs=out_specs,
            scratch_shapes=scratch,
        ),
        compiler_params=pltpu.CompilerParams(
            dimension_semantics=dims,
            vmem_limit_bytes=vmem_limit),
    )(xcol_p, w_p)

    # ---- BN statistics: var = E[y^2] - mean^2 (f32, true M) -------------
    tot = jnp.sum(stats, axis=0)                               # [2, C_pad]
    inv_m = jnp.float32(1.0 / M)
    mean = tot[0] * inv_m
    var = jnp.maximum(tot[1] * inv_m - mean * mean, 0.0)
    inv_std = lax.rsqrt(var + BN_EPS)
    gamma_p = jnp.pad(gamma.astype(jnp.float32), (0, C_pad - C_out))
    beta_p = jnp.pad(beta.astype(jnp.float32), (0, C_pad - C_out))
    scale = (gamma_p * inv_std).reshape(1, C_pad)
    shift = (beta_p - mean * gamma_p * inv_std).reshape(1, C_pad)

    # ---- pass 2: normalize + affine + LeakyReLU (channels-major output) --
    out_cm = pl.pallas_call(
        bn_lrelu_kernel,
        out_shape=jax.ShapeDtypeStruct((C_pad, M_pad), jnp.float32),
        grid_spec=pltpu.PrefetchScalarGridSpec(
            num_scalar_prefetch=0,
            grid=(gm,),
            in_specs=[
                pl.BlockSpec((tile_m, C_pad), lambda i: (i, 0)),
                pl.BlockSpec((1, C_pad), lambda i: (0, 0)),
                pl.BlockSpec((1, C_pad), lambda i: (0, 0)),
            ],
            out_specs=pl.BlockSpec((C_pad, tile_m), lambda i: (0, i)),
        ),
        compiler_params=pltpu.CompilerParams(
            dimension_semantics=("parallel",),
            vmem_limit_bytes=vmem_limit),
    )(y_flat, scale, shift)

    # Channels-major [C_out, N*OH*OW] -> NCHW: contiguous OH*OW runs, cheap
    # leading-dim permutation (vs the old short-run NHWC->NCHW transpose).
    out = out_cm[:C_out, :M].reshape(C_out, N, OH, OW).transpose(1, 0, 2, 3)
    return out


# --------------------------------------------------------------------------
# Reference (mirrors kernel rounding: bf16 conv operands, bf16-stored y,
# f32 BN statistics and normalization math)
# --------------------------------------------------------------------------
def reference(x, weight, gamma, beta, *, ksz, st, pad):
    xq = x.astype(jnp.bfloat16).astype(jnp.float32)
    wq = weight.astype(jnp.bfloat16).astype(jnp.float32)
    y = lax.conv_general_dilated(
        xq, wq, window_strides=(st, st),
        padding=[(pad, pad), (pad, pad)],
        dimension_numbers=("NCHW", "OIHW", "NCHW"))
    yb = y.astype(jnp.bfloat16).astype(jnp.float32)   # kernel stores y in bf16
    mean = jnp.mean(yb, axis=(0, 2, 3), keepdims=True)
    var = jnp.mean((yb - mean) ** 2, axis=(0, 2, 3), keepdims=True)
    y_hat = (yb - mean) * lax.rsqrt(var + BN_EPS)
    y_hat = y_hat * gamma.reshape(1, -1, 1, 1) + beta.reshape(1, -1, 1, 1)
    return jnp.where(y_hat >= 0, y_hat, LEAKY_SLOPE * y_hat)


if __name__ == "__main__":
    # Small DCGAN-style downsample config.
    N, C_in, H, W = 2, 4, 16, 16
    C_out, ksz, st, pad = 8, 4, 2, 1

    key = jax.random.PRNGKey(0)
    kx, kw, kg = jax.random.split(key, 3)

    x = jax.random.normal(kx, (N, C_in, H, W), dtype=jnp.float32)
    # Conv2dDCGAN: weight ~ N(0, 0.02), bias=False
    weight = 0.02 * jax.random.normal(kw, (C_out, C_in, ksz, ksz), dtype=jnp.float32)
    # BatchNorm2dDCGAN: weight ~ N(1, 0.02), bias = 0
    gamma = 1.0 + 0.02 * jax.random.normal(kg, (C_out,), dtype=jnp.float32)
    beta = jnp.zeros((C_out,), dtype=jnp.float32)

    out = downsample_block(x, weight, gamma, beta, ksz=ksz, st=st, pad=pad)
    out = jax.block_until_ready(out)

    ref = reference(x, weight, gamma, beta, ksz=ksz, st=st, pad=pad)
    assert out.shape == (N, C_out, H // st, W // st)
    assert np.allclose(np.asarray(out), np.asarray(ref), atol=2e-2), "mismatch vs reference"

    print("KERNEL_OK")
</pallas_src>

<mosaic_0001>
module attributes {stable_mosaic.version = 11 : i64} {
  func.func @conv_stats_resident_kernel(%arg0: i32, %arg1: memref<128x128xbf16, #tpu.memory_space<vmem>>, %arg2: memref<128x128xbf16, #tpu.memory_space<vmem>>, %arg3: memref<128x128xbf16, #tpu.memory_space<vmem>>, %arg4: memref<1x2x128xf32, #tpu.memory_space<vmem>>) attributes {dimension_semantics = [#tpu.dimension_semantics<parallel>], iteration_bounds = array<i64: 1>, scalar_prefetch = 0 : i64, scratch_operands = 0 : i64, tpu.core_type = #tpu.core_type<tc>, window_params = [{transform_indices = @transform_0, window_bounds = array<i64: 128, 128>}, {pipeline_mode = #tpu.pipeline_mode<synchronous>, transform_indices = @transform_1, window_bounds = array<i64: 128, 128>}, {transform_indices = @transform_2, window_bounds = array<i64: 128, 128>}, {transform_indices = @transform_3, window_bounds = array<i64: 1, 2, 128>}]} {
    %c0 = arith.constant 0 : index
    %c0_0 = arith.constant 0 : index
    %0 = vector.load %arg1[%c0, %c0_0] : memref<128x128xbf16, #tpu.memory_space<vmem>>, vector<128x128xbf16>
    %c0_1 = arith.constant 0 : index
    %c0_2 = arith.constant 0 : index
    %1 = vector.load %arg2[%c0_1, %c0_2] : memref<128x128xbf16, #tpu.memory_space<vmem>>, vector<128x128xbf16>
    %cst = arith.constant dense<0.000000e+00> : vector<128x128xf32>
    %2 = tpu.matmul %0, %1, %cst {dimension_numbers = #tpu.dot_dimension_numbers<[1], [0], [0], [1], [0, 0, 1, 1], [], []>} : vector<128x128xbf16>, vector<128x128xbf16>, vector<128x128xf32> -> vector<128x128xf32>
    %3 = arith.truncf %2 : vector<128x128xf32> to vector<128x128xbf16>
    %c0_3 = arith.constant 0 : index
    %c0_4 = arith.constant 0 : index
    %4 = vector.load %arg3[%c0_3, %c0_4] : memref<128x128xbf16, #tpu.memory_space<vmem>>, vector<128x128xbf16>
    tpu.vector_store %arg3[%c0_3, %c0_4], %3 {strides = array<i32>} : memref<128x128xbf16, #tpu.memory_space<vmem>>, vector<128x128xbf16>,
    %5 = arith.extf %3 : vector<128x128xbf16> to vector<128x128xf32>
    %cst_5 = arith.constant dense<0.000000e+00> : vector<128xf32>
    %6 = vector.multi_reduction <add>, %5, %cst_5 [0] : vector<128x128xf32> to vector<128xf32>
    %7 = vector.shape_cast %6 : vector<128xf32> to vector<1x128xf32>
    %c0_6 = arith.constant 0 : index
    %c0_7 = arith.constant 0 : index
    %c0_8 = arith.constant 0 : index
    %8 = vector.load %arg4[%c0_6, %c0_7, %c0_8] : memref<1x2x128xf32, #tpu.memory_space<vmem>>, vector<1x1x128xf32>
    %9 = vector.shape_cast %8 : vector<1x1x128xf32> to vector<1x128xf32>
    %10 = vector.shape_cast %7 : vector<1x128xf32> to vector<1x1x128xf32>
    tpu.vector_store %arg4[%c0_6, %c0_7, %c0_8], %10 {strides = array<i32>} : memref<1x2x128xf32, #tpu.memory_space<vmem>>, vector<1x1x128xf32>,
    %11 = arith.mulf %5, %5 : vector<128x128xf32>
    %cst_9 = arith.constant dense<0.000000e+00> : vector<128xf32>
    %12 = vector.multi_reduction <add>, %11, %cst_9 [0] : vector<128x128xf32> to vector<128xf32>
    %13 = vector.shape_cast %12 : vector<128xf32> to vector<1x128xf32>
    %c0_10 = arith.constant 0 : index
    %c1 = arith.constant 1 : index
    %c0_11 = arith.constant 0 : index
    %14 = vector.load %arg4[%c0_10, %c1, %c0_11] : memref<1x2x128xf32, #tpu.memory_space<vmem>>, vector<1x1x128xf32>
    %15 = vector.shape_cast %14 : vector<1x1x128xf32> to vector<1x128xf32>
    %16 = vector.shape_cast %13 : vector<1x128xf32> to vector<1x1x128xf32>
    tpu.vector_store %arg4[%c0_10, %c1, %c0_11], %16 {strides = array<i32>} : memref<1x2x128xf32, #tpu.memory_space<vmem>>, vector<1x1x128xf32>,
    return
  }
  func.func @transform_0(%arg0: i32) -> (i32, i32) {
    %c0_i32 = arith.constant 0 : i32
    %c0_i32_0 = arith.constant 0 : i32
    return %arg0, %c0_i32 : i32, i32
  }
  func.func @transform_1(%arg0: i32) -> (i32, i32) {
    %c0_i32 = arith.constant 0 : i32
    %c0_i32_0 = arith.constant 0 : i32
    %c0_i32_1 = arith.constant 0 : i32
    return %c0_i32, %c0_i32_0 : i32, i32
  }
  func.func @transform_2(%arg0: i32) -> (i32, i32) {
    %c0_i32 = arith.constant 0 : i32
    %c0_i32_0 = arith.constant 0 : i32
    return %arg0, %c0_i32 : i32, i32
  }
  func.func @transform_3(%arg0: i32) -> (i32, i32, i32) {
    %c0_i32 = arith.constant 0 : i32
    %c0_i32_0 = arith.constant 0 : i32
    %c0_i32_1 = arith.constant 0 : i32
    return %arg0, %c0_i32, %c0_i32_0 : i32, i32, i32
  }
}

module attributes {stable_mosaic.version = 11 : i64} {
  func.func @bn_lrelu_kernel(%arg0: i32, %arg1: memref<128x128xbf16, #tpu.memory_space<vmem>>, %arg2: memref<1x128xf32, #tpu.memory_space<vmem>>, %arg3: memref<1x128xf32, #tpu.memory_space<vmem>>, %arg4: memref<128x128xf32, #tpu.memory_space<vmem>>) attributes {dimension_semantics = [#tpu.dimension_semantics<parallel>], iteration_bounds = array<i64: 1>, scalar_prefetch = 0 : i64, scratch_operands = 0 : i64, tpu.core_type = #tpu.core_type<tc>, window_params = [{transform_indices = @transform_0, window_bounds = array<i64: 128, 128>}, {pipeline_mode = #tpu.pipeline_mode<synchronous>, transform_indices = @transform_1, window_bounds = array<i64: 1, 128>}, {pipeline_mode = #tpu.pipeline_mode<synchronous>, transform_indices = @transform_2, window_bounds = array<i64: 1, 128>}, {transform_indices = @transform_3, window_bounds = array<i64: 128, 128>}]} {
    %c0 = arith.constant 0 : index
    %c0_0 = arith.constant 0 : index
    %0 = vector.load %arg1[%c0, %c0_0] : memref<128x128xbf16, #tpu.memory_space<vmem>>, vector<128x128xbf16>
    %1 = arith.extf %0 : vector<128x128xbf16> to vector<128x128xf32>
    %c0_1 = arith.constant 0 : index
    %c0_2 = arith.constant 0 : index
    %2 = vector.load %arg2[%c0_1, %c0_2] : memref<1x128xf32, #tpu.memory_space<vmem>>, vector<1x128xf32>
    %3 = vector.broadcast %2 : vector<1x128xf32> to vector<128x128xf32>
    %4 = arith.mulf %1, %3 : vector<128x128xf32>
    %c0_3 = arith.constant 0 : index
    %c0_4 = arith.constant 0 : index
    %5 = vector.load %arg3[%c0_3, %c0_4] : memref<1x128xf32, #tpu.memory_space<vmem>>, vector<1x128xf32>
    %6 = vector.broadcast %5 : vector<1x128xf32> to vector<128x128xf32>
    %7 = arith.addf %4, %6 : vector<128x128xf32>
    %cst = arith.constant 0.000000e+00 : f32
    %8 = vector.broadcast %cst : f32 to vector<128x128xf32>
    %9 = arith.cmpf oge, %7, %8 : vector<128x128xf32>
    %cst_5 = arith.constant 2.000000e-01 : f32
    %10 = vector.broadcast %cst_5 : f32 to vector<128x128xf32>
    %11 = arith.mulf %10, %7 : vector<128x128xf32>
    %12 = arith.select %9, %7, %11 : vector<128x128xi1>, vector<128x128xf32>
    %13 = tpu.transpose %12, [1, 0] : vector<128x128xf32> -> vector<128x128xf32>
    %c0_6 = arith.constant 0 : index
    %c0_7 = arith.constant 0 : index
    %14 = vector.load %arg4[%c0_6, %c0_7] : memref<128x128xf32, #tpu.memory_space<vmem>>, vector<128x128xf32>
    tpu.vector_store %arg4[%c0_6, %c0_7], %13 {strides = array<i32>} : memref<128x128xf32, #tpu.memory_space<vmem>>, vector<128x128xf32>,
    return
  }
  func.func @transform_0(%arg0: i32) -> (i32, i32) {
    %c0_i32 = arith.constant 0 : i32
    %c0_i32_0 = arith.constant 0 : i32
    return %arg0, %c0_i32 : i32, i32
  }
  func.func @transform_1(%arg0: i32) -> (i32, i32) {
    %c0_i32 = arith.constant 0 : i32
    %c0_i32_0 = arith.constant 0 : i32
    %c0_i32_1 = arith.constant 0 : i32
    return %c0_i32, %c0_i32_0 : i32, i32
  }
  func.func @transform_2(%arg0: i32) -> (i32, i32) {
    %c0_i32 = arith.constant 0 : i32
    %c0_i32_0 = arith.constant 0 : i32
    %c0_i32_1 = arith.constant 0 : i32
    return %c0_i32, %c0_i32_0 : i32, i32
  }
  func.func @transform_3(%arg0: i32) -> (i32, i32) {
    %c0_i32 = arith.constant 0 : i32
    %c0_i32_0 = arith.constant 0 : i32
    return %c0_i32, %arg0 : i32, i32
  }
}

</mosaic_0001>

<bundles_post_ra>
// kernel: downsample_block.2
= control target key start
LH: loop header
LB: loop body
LE: loop exit
PB: predicated region body
PF: predicated region fallthrough
CT: control target
= control target key end

     0   :  { %s676_s1 = inlined_call_operand.vmem [shape: bf16[128,128], index: 1, kind: input, shape index: {}]   ;;  %s677_s0 = inlined_call_operand.vmem [shape: bf16[128,128], index: 0, kind: input, shape index: {}]   ;;  %s678_s2 = inlined_call_operand.vmem [shape: bf16[128,128], index: 2, kind: output, shape index: {0}]   ;;  %s679_s3 = inlined_call_operand.vmem [shape: f32[1,2,128], index: 3, kind: output, shape index: {1}]  }
   0x1   :  { %v562_v0 = vld [vmem:[%s676_s1] sm:$0xff]   ;;  %v563_v1 = vld [vmem:[%s676_s1 + $0x8] sm:$0xff]   ;;  %v564_v2 = vld [vmem:[%s676_s1 + $0x10] sm:$0xff]  }
   0x2   :  { %514 = vmatprep.subr.bf16.mxu0 %v562_v0  ;;  %546 = vmatprep.subr.bf16.mxu1 %v562_v0  ;;  %v565_v3 = vld [vmem:[%s676_s1 + $0x18] sm:$0xff]   ;;  %v570_v4 = vld [vmem:[%s677_s0] sm:$0xff]   ;;  %v567_v7 = vld [vmem:[%s676_s1 + $0x28] sm:$0xff]  }
   0x3   :  { %515 = vmatpush3.bf16.msra.mxu0 %v562_v0  ;;  %554 = vmatpush3.bf16.msra.mxu1 %v562_v0  ;;  %v566_v5 = vld [vmem:[%s676_s1 + $0x20] sm:$0xff]   ;;  %v568_v8 = vld [vmem:[%s676_s1 + $0x30] sm:$0xff]   ;;  %v569_v9 = vld [vmem:[%s676_s1 + $0x38] sm:$0xff]  }
   0x4   :  { %516 = vmatprep.subr.bf16.mxu0 %v563_v1  ;;  %547 = vmatprep.subr.bf16.mxu1 %v563_v1  ;;  %v574_v6 = vld [vmem:[%s677_s0 + $0x20] sm:$0xff]   ;;  %v571_v10 = vld [vmem:[%s677_s0 + $0x8] sm:$0xff]   ;;  %v572_v12 = vld [vmem:[%s677_s0 + $0x10] sm:$0xff]  }
   0x5   :  { %530 = vmatprep.mubr.bf16.mxu0 %v570_v4  ;;  %538 = vmatprep.mubr.bf16.mxu1 %v574_v6  ;;  %v575_v11 = vld [vmem:[%s677_s0 + $0x28] sm:$0xff]   ;;  %v576_v13 = vld [vmem:[%s677_s0 + $0x30] sm:$0xff]   ;;  %v573_v14 = vld [vmem:[%s677_s0 + $0x18] sm:$0xff]  }
   0x6   :  { %v577_v15 = vld [vmem:[%s677_s0 + $0x38] sm:$0xff]  }
   0x7   :  { %517 = vmatpush3.bf16.msra.mxu0 %v563_v1  ;;  %555 = vmatpush3.bf16.msra.mxu1 %v563_v1 }
   0x8   :  { %518 = vmatprep.subr.bf16.mxu0 %v564_v2  ;;  %548 = vmatprep.subr.bf16.mxu1 %v564_v2 }
   0xb   :  { %519 = vmatpush3.bf16.msra.mxu0 %v564_v2  ;;  %556 = vmatpush3.bf16.msra.mxu1 %v564_v2 }
   0xc   :  { %520 = vmatprep.subr.bf16.mxu0 %v565_v3  ;;  %549 = vmatprep.subr.bf16.mxu1 %v565_v3 }
   0xf   :  { %521 = vmatpush3.bf16.msra.mxu0 %v565_v3  ;;  %557 = vmatpush3.bf16.msra.mxu1 %v565_v3 }
  0x10   :  { %522 = vmatprep.subr.bf16.mxu0 %v566_v5  ;;  %550 = vmatprep.subr.bf16.mxu1 %v566_v5 }
  0x13   :  { %523 = vmatpush3.bf16.msra.mxu0 %v566_v5  ;;  %558 = vmatpush3.bf16.msra.mxu1 %v566_v5 }
  0x14   :  { %524 = vmatprep.subr.bf16.mxu0 %v567_v7  ;;  %551 = vmatprep.subr.bf16.mxu1 %v567_v7 }
  0x17   :  { %525 = vmatpush3.bf16.msra.mxu0 %v567_v7  ;;  %559 = vmatpush3.bf16.msra.mxu1 %v567_v7 }
  0x18   :  { %526 = vmatprep.subr.bf16.mxu0 %v568_v8  ;;  %552 = vmatprep.subr.bf16.mxu1 %v568_v8 }
  0x1b   :  { %527 = vmatpush3.bf16.msra.mxu0 %v568_v8  ;;  %560 = vmatpush3.bf16.msra.mxu1 %v568_v8 }
  0x1c   :  { %528 = vmatprep.subr.bf16.mxu0 %v569_v9  ;;  %553 = vmatprep.subr.bf16.mxu1 %v569_v9 }
  0x1f   :  { %529 = vmatpush3.bf16.msra.mxu0 %v569_v9  ;;  %561 = vmatpush3.bf16.msra.mxu1 %v569_v9 }
  0x22   :  { %531 = vmatmul.mubr.bf16.vlgmr.msra.gmra.mrb[0].mxu0 %v571_v10  ;;  %539 = vmatmul.mubr.bf16.vlgmr.msra.gmra.mrb[0].mxu1 %v575_v11 }
  0x23   :  { %534 = vmatprep.mubr.bf16.mxu0 %v572_v12  ;;  %542 = vmatprep.mubr.bf16.mxu1 %v576_v13 }
  0x2a   :  { %535 = vmatmul.mubr.bf16.gmra.mrb[4].mxu0 %v573_v14  ;;  %543 = vmatmul.mubr.bf16.gmra.mrb[4].mxu1 %v577_v15 }
  0xf5   :  { %v532_v16 = vpop.f32.mrb[0].mxu0  ;;  %v540_v17 = vpop.f32.mrb[0].mxu1 }
  0xf6   :  { %v176_v18 = vpop.f32.mrb[1].mxu0  ;;  %v208_v19 = vpop.f32.mrb[1].mxu1 }
  0xf7   :  { %v533_v20 = vpop.f32.mrb[2].mxu0  ;;  %v541_v21 = vpop.f32.mrb[2].mxu1 }
  0xf8   :  { %v240_v22 = vpack.c.bf16 %v533_v20, %v532_v16  ;;  %v179_v23 = vpop.f32.mrb[3].mxu0  ;;  %v244_v24 = vpack.c.bf16 %v541_v21, %v540_v17  ;;  %v211_v25 = vpop.f32.mrb[3].mxu1 }
  0xf9   :  { %v239_v26 = vpack.c.bf16 %v179_v23, %v176_v18  ;;  %v243_v27 = vpack.c.bf16 %v211_v25, %v208_v19 }
  0xfa   :  { %491 = vst [vmem:[%s678_s2 + $0x8] sm:$0xff] %v240_v22   ;;  %495 = vst [vmem:[%s678_s2 + $0x28] sm:$0xff] %v244_v24   ;;  %v321_v28 = vunpack.c.l.bf16 %v240_v22  ;;  %v322_v31 = vunpack.c.h.bf16 %v240_v22  ;;  %v329_v7 = vunpack.c.l.bf16 %v244_v24  ;;  %v330_v11 = vunpack.c.h.bf16 %v244_v24 }
  0xfb   :  { %455 = vst [vmem:[%s678_s2] sm:$0xff] %v239_v26   ;;  %v319_v29 = vunpack.c.l.bf16 %v239_v26  ;;  %v320_v30 = vunpack.c.h.bf16 %v239_v26  ;;  %494 = vst [vmem:[%s678_s2 + $0x20] sm:$0xff] %v243_v27   ;;  %v327_v2 = vunpack.c.l.bf16 %v243_v27  ;;  %v328_v5 = vunpack.c.h.bf16 %v243_v27 }
  0xfc   :  { %v359_v39 = vmul.f32 %v321_v28, %v321_v28  ;;  %v360_v44 = vmul.f32 %v322_v31, %v322_v31  ;;  %v367_v15 = vmul.f32 %v329_v7, %v329_v7  ;;  %v368_v19 = vmul.f32 %v330_v11, %v330_v11 }
  0xfd   :  { %v335_v32 = vadd.f32 %v320_v30, %v319_v29  ;;  %v357_v33 = vmul.f32 %v319_v29, %v319_v29  ;;  %v358_v34 = vmul.f32 %v320_v30, %v320_v30  ;;  %v536_v35 = vpop.f32.mrb[4].mxu0  ;;  %v544_v36 = vpop.f32.mrb[4].mxu1  ;;  %v365_v9 = vmul.f32 %v327_v2, %v327_v2 }
  0xfe   :  { %v192_v37 = vpop.f32.mrb[5].mxu0  ;;  %v224_v38 = vpop.f32.mrb[5].mxu1  ;;  %v366_v13 = vmul.f32 %v328_v5, %v328_v5 }
  0xff   :  { %v336_v40 = vadd.f32 %v335_v32, %v321_v28  ;;  %v373_v41 = vadd.f32 %v358_v34, %v357_v33  ;;  %v537_v42 = vpop.f32.mrb[6].mxu0  ;;  %v545_v43 = vpop.f32.mrb[6].mxu1 }
 0x100   :  { %v242_v45 = vpack.c.bf16 %v537_v42, %v536_v35  ;;  %v195_v46 = vpop.f32.mrb[7].mxu0  ;;  %v246_v47 = vpack.c.bf16 %v545_v43, %v544_v36  ;;  %v227_v48 = vpop.f32.mrb[7].mxu1 }
 0x101   :  { %v374_v49 = vadd.f32 %v373_v41, %v359_v39  ;;  %v241_v50 = vpack.c.bf16 %v195_v46, %v192_v37  ;;  %v337_v51 = vadd.f32 %v336_v40, %v322_v31  ;;  %v245_v52 = vpack.c.bf16 %v227_v48, %v224_v38 }
 0x102   :  { %493 = vst [vmem:[%s678_s2 + $0x18] sm:$0xff] %v242_v45   ;;  %497 = vst [vmem:[%s678_s2 + $0x38] sm:$0xff] %v246_v47   ;;  %v325_v56 = vunpack.c.l.bf16 %v242_v45  ;;  %v326_v59 = vunpack.c.h.bf16 %v242_v45  ;;  %v333_v23 = vunpack.c.l.bf16 %v246_v47  ;;  %v334_v28 = vunpack.c.h.bf16 %v246_v47 }
 0x103   :  { %492 = vst [vmem:[%s678_s2 + $0x10] sm:$0xff] %v241_v50   ;;  %v323_v53 = vunpack.c.l.bf16 %v241_v50  ;;  %v324_v54 = vunpack.c.h.bf16 %v241_v50  ;;  %v375_v55 = vadd.f32 %v374_v49, %v360_v44  ;;  %496 = vst [vmem:[%s678_s2 + $0x30] sm:$0xff] %v245_v52   ;;  %v331_v18 = vunpack.c.l.bf16 %v245_v52 }
 0x104   :  { %v363_v63 = vmul.f32 %v325_v56, %v325_v56  ;;  %v364_v3 = vmul.f32 %v326_v59, %v326_v59  ;;  %v332_v21 = vunpack.c.h.bf16 %v245_v52  ;;  %v371_v24 = vmul.f32 %v333_v23, %v333_v23 }
 0x105   :  { %v338_v57 = vadd.f32 %v337_v51, %v323_v53  ;;  %v361_v58 = vmul.f32 %v323_v53, %v323_v53  ;;  %v362_v61 = vmul.f32 %v324_v54, %v324_v54  ;;  %v369_v26 = vmul.f32 %v331_v18, %v331_v18 }
 0x106   :  { %v370_v30 = vmul.f32 %v332_v21, %v332_v21  ;;  %v372_v34 = vmul.f32 %v334_v28, %v334_v28 }
 0x107   :  { %v339_v60 = vadd.f32 %v338_v57, %v324_v54  ;;  %v376_v62 = vadd.f32 %v375_v55, %v361_v58 }
 0x109   :  { %v340_v0 = vadd.f32 %v339_v60, %v325_v56  ;;  %v377_v1 = vadd.f32 %v376_v62, %v362_v61 }
 0x10b   :  { %v378_v4 = vadd.f32 %v377_v1, %v363_v63  ;;  %v341_v6 = vadd.f32 %v340_v0, %v326_v59 }
 0x10d   :  { %v342_v8 = vadd.f32 %v341_v6, %v327_v2  ;;  %v379_v10 = vadd.f32 %v378_v4, %v364_v3 }
 0x10f   :  { %v343_v12 = vadd.f32 %v342_v8, %v328_v5  ;;  %v380_v14 = vadd.f32 %v379_v10, %v365_v9 }
 0x111   :  { %v344_v16 = vadd.f32 %v343_v12, %v329_v7  ;;  %v381_v17 = vadd.f32 %v380_v14, %v366_v13 }
 0x113   :  { %v382_v20 = vadd.f32 %v381_v17, %v367_v15  ;;  %v345_v22 = vadd.f32 %v344_v16, %v330_v11 }
 0x115   :  { %v346_v25 = vadd.f32 %v345_v22, %v331_v18  ;;  %v383_v27 = vadd.f32 %v382_v20, %v368_v19 }
 0x117   :  { %v347_v29 = vadd.f32 %v346_v25, %v332_v21  ;;  %v384_v31 = vadd.f32 %v383_v27, %v369_v26 }
 0x119   :  { %v348_v32 = vadd.f32 %v347_v29, %v333_v23  ;;  %v385_v33 = vadd.f32 %v384_v31, %v370_v30 }
 0x11b   :  { %v349_v35 = vadd.f32 %v348_v32, %v334_v28  ;;  %v386_v36 = vadd.f32 %v385_v33, %v371_v24 }
 0x11d   :  { %v350_v37 = vrot.slane %v349_v35, 4  ;;  %v387_v38 = vadd.f32 %v386_v36, %v372_v34 }
 0x11f   :  { %v351_v39 = vadd.f32 %v350_v37, %v349_v35  ;;  %v388_v40 = vrot.slane %v387_v38, 4 }
 0x121   :  { %v352_v41 = vrot.slane %v351_v39, 2  ;;  %v389_v42 = vadd.f32 %v388_v40, %v387_v38 }
 0x123   :  { %v353_v43 = vadd.f32 %v352_v41, %v351_v39  ;;  %v390_v44 = vrot.slane %v389_v42, 2 }
 0x125   :  { %v354_v45 = vrot.slane %v353_v43, 1  ;;  %v391_v46 = vadd.f32 %v390_v44, %v389_v42 }
 0x127   :  { %v355_v47 = vadd.f32 %v354_v45, %v353_v43  ;;  %v392_v48 = vrot.slane %v391_v46, 1 }
 0x129   :  { %356 = vst [vmem:[%s679_s3] sm:$0x1] %v355_v47  ;;  %v393_v49 = vadd.f32 %v392_v48, %v391_v46 }
 0x12b   :  { %394 = vst [vmem:[%s679_s3 + $0x1] sm:$0x1] %v393_v49 }

// kernel: downsample_block.3
= control target key start
LH: loop header
LB: loop body
LE: loop exit
PB: predicated region body
PF: predicated region fallthrough
CT: control target
= control target key end

     0   :  { %s367_s0 = inlined_call_operand.vmem [shape: bf16[128,128], index: 0, kind: input, shape index: {}]   ;;  %s368_s1 = inlined_call_operand.vmem [shape: f32[1,128], index: 1, kind: input, shape index: {}]   ;;  %s369_s2 = inlined_call_operand.vmem [shape: f32[1,128], index: 2, kind: input, shape index: {}]   ;;  %s370_s3 = inlined_call_operand.vmem [shape: f32[128,128], index: 3, kind: output, shape index: {}]  }
   0x1   :  { %v195_v0 = vld [vmem:[%s367_s0] sm:$0xff]   ;;  %v226_v4 = vld [vmem:[%s367_s0 + $0x8] sm:$0xff]   ;;  %v227_v10 = vld [vmem:[%s367_s0 + $0x10] sm:$0xff]  }
   0x2   :  { %v259_v1 = vld [vmem:[%s368_s1] ss:$0 sm:$0xff]  ;;  %v196_v2 = vunpack.c.l.bf16 %v195_v0  ;;  %v197_v3 = vunpack.c.h.bf16 %v195_v0  ;;  %v200_v6 = vunpack.c.l.bf16 %v226_v4  ;;  %v201_v7 = vunpack.c.h.bf16 %v226_v4  ;;  %v228_v25 = vld [vmem:[%s367_s0 + $0x18] sm:$0xff]   ;;  %v230_v47 = vld [vmem:[%s367_s0 + $0x28] sm:$0xff]  }
   0x3   :  { %v267_v5 = vld [vmem:[%s369_s2] ss:$0 sm:$0xff]  ;;  %v204_v15 = vunpack.c.l.bf16 %v227_v10  ;;  %v205_v20 = vunpack.c.h.bf16 %v227_v10  ;;  %v208_v26 = vunpack.c.l.bf16 %v228_v25  ;;  %v209_v31 = vunpack.c.h.bf16 %v228_v25  ;;  %v231_v58 = vld [vmem:[%s367_s0 + $0x30] sm:$0xff]  }
   0x4   :  { %v53_v8 = vmul.f32 %v196_v2, %v259_v1  ;;  %v54_v9 = vmul.f32 %v197_v3, %v259_v1  ;;  %v55_v11 = vmul.f32 %v200_v6, %v259_v1  ;;  %v56_v14 = vmul.f32 %v201_v7, %v259_v1  ;;  %v229_v36 = vld [vmem:[%s367_s0 + $0x20] sm:$0xff]   ;;  %v232_v7 = vld [vmem:[%s367_s0 + $0x38] sm:$0xff]  }
   0x5   :  { %v57_v24 = vmul.f32 %v204_v15, %v259_v1  ;;  %v58_v30 = vmul.f32 %v205_v20, %v259_v1  ;;  %v59_v35 = vmul.f32 %v208_v26, %v259_v1  ;;  %v60_v37 = vmul.f32 %v209_v31, %v259_v1 }
   0x6   :  { %v76_v12 = vadd.f32 %v267_v5, %v53_v8  ;;  %v77_v13 = vadd.f32 %v267_v5, %v54_v9  ;;  %v78_v18 = vadd.f32 %v267_v5, %v55_v11  ;;  %v79_v23 = vadd.f32 %v267_v5, %v56_v14 }
   0x7   :  { %v80_v29 = vadd.f32 %v267_v5, %v57_v24  ;;  %v81_v34 = vadd.f32 %v267_v5, %v58_v30  ;;  %v82_v40 = vadd.f32 %v267_v5, %v59_v35  ;;  %v212_v41 = vunpack.c.l.bf16 %v229_v36 }
   0x8   :  { %vm92_vm0 = vcmp.ge.f32.partialorder %v76_v12, 0.0  ;;  %v108_v16 = vmul.f32 0.2, %v76_v12  ;;  %v109_v17 = vmul.f32 0.2, %v77_v13  ;;  %vm93_vm1 = vcmp.ge.f32.partialorder %v77_v13, 0.0 }
   0x9   :  { %v110_v22 = vmul.f32 0.2, %v78_v18  ;;  %vm94_vm2 = vcmp.ge.f32.partialorder %v78_v18, 0.0  ;;  %v111_v28 = vmul.f32 0.2, %v79_v23  ;;  %vm95_vm3 = vcmp.ge.f32.partialorder %v79_v23, 0.0 }
   0xa   :  { %v124_v19 = vsel %vm92_vm0, %v76_v12, %v108_v16  ;;  %v125_v21 = vsel %vm93_vm1, %v77_v13, %v109_v17  ;;  %v112_v33 = vmul.f32 0.2, %v80_v29  ;;  %vm96_vm4 = vcmp.ge.f32.partialorder %v80_v29, 0.0 }
   0xb   :  { %140 = vxpose.xlu0.b32.start [1/16] %v124_v19, 128  ;;  %v126_v27 = vsel %vm94_vm2, %v78_v18, %v110_v22  ;;  %v127_v32 = vsel %vm95_vm3, %v79_v23, %v111_v28  ;;  %v113_v39 = vmul.f32 0.2, %v81_v34  ;;  %vm97_vm5 = vcmp.ge.f32.partialorder %v81_v34, 0.0 }
   0xc   :  { %v128_v38 = vsel %vm96_vm4, %v80_v29, %v112_v33  ;;  %v83_v42 = vadd.f32 %v267_v5, %v60_v37  ;;  %v114_v44 = vmul.f32 0.2, %v82_v40  ;;  %v61_v45 = vmul.f32 %v212_v41, %v259_v1 }
   0xd   :  { %v129_v43 = vsel %vm97_vm5, %v81_v34, %v113_v39  ;;  %v213_v46 = vunpack.c.h.bf16 %v229_v36  ;;  %vm98_vm6 = vcmp.ge.f32.partialorder %v82_v40, 0.0  ;;  %v216_v48 = vunpack.c.l.bf16 %v230_v47 }
   0xe   :  { %v130_v49 = vsel %vm98_vm6, %v82_v40, %v114_v44  ;;  %v115_v50 = vmul.f32 0.2, %v83_v42  ;;  %v84_v51 = vadd.f32 %v267_v5, %v61_v45  ;;  %vm99_vm7 = vcmp.ge.f32.partialorder %v83_v42, 0.0 }
   0xf   :  { %141 = vxpose.xlu0.b32.cont [2/16] %v125_v21, 128  ;;  %v62_v52 = vmul.f32 %v213_v46, %v259_v1  ;;  %v217_v53 = vunpack.c.h.bf16 %v230_v47  ;;  %v63_v57 = vmul.f32 %v216_v48, %v259_v1  ;;  %v220_v63 = vunpack.c.l.bf16 %v231_v58 }
  0x10   :  { %v131_v54 = vsel %vm99_vm7, %v83_v42, %v115_v50  ;;  %v116_v55 = vmul.f32 0.2, %v84_v51  ;;  %vm100_vm8 = vcmp.ge.f32.partialorder %v84_v51, 0.0  ;;  %v221_v0 = vunpack.c.h.bf16 %v231_v58 }
  0x11   :  { %v85_v56 = vadd.f32 %v267_v5, %v62_v52  ;;  %v64_v59 = vmul.f32 %v217_v53, %v259_v1  ;;  %v86_v62 = vadd.f32 %v267_v5, %v63_v57  ;;  %v65_v6 = vmul.f32 %v220_v63, %v259_v1 }
  0x12   :  { %v132_v60 = vsel %vm100_vm8, %v84_v51, %v116_v55  ;;  %v66_v8 = vmul.f32 %v221_v0, %v259_v1  ;;  %v224_v12 = vunpack.c.l.bf16 %v232_v7  ;;  %v225_v13 = vunpack.c.h.bf16 %v232_v7 }
  0x13   :  { %142 = vxpose.xlu0.b32.cont [3/16] %v126_v27, 128  ;;  %v117_v61 = vmul.f32 0.2, %v85_v56  ;;  %vm101_vm9 = vcmp.ge.f32.partialorder %v85_v56, 0.0  ;;  %v118_v3 = vmul.f32 0.2, %v86_v62  ;;  %v87_v4 = vadd.f32 %v267_v5, %v64_v59 }
  0x14   :  { %vm102_vm10 = vcmp.ge.f32.partialorder %v86_v62, 0.0  ;;  %v88_v11 = vadd.f32 %v267_v5, %v65_v6  ;;  %v89_v16 = vadd.f32 %v267_v5, %v66_v8  ;;  %v67_v17 = vmul.f32 %v224_v12, %v259_v1 }
  0x15   :  { %v133_v2 = vsel %vm101_vm9, %v85_v56, %v117_v61  ;;  %v134_v9 = vsel %vm102_vm10, %v86_v62, %v118_v3  ;;  %v119_v10 = vmul.f32 0.2, %v87_v4  ;;  %vm103_vm11 = vcmp.ge.f32.partialorder %v87_v4, 0.0 }
  0x16   :  { %v120_v15 = vmul.f32 0.2, %v88_v11  ;;  %vm104_vm12 = vcmp.ge.f32.partialorder %v88_v11, 0.0  ;;  %v121_v19 = vmul.f32 0.2, %v89_v16  ;;  %v90_v20 = vadd.f32 %v267_v5, %v67_v17 }
  0x17   :  { %143 = vxpose.xlu0.b32.cont [4/16] %v127_v32, 128  ;;  %v135_v14 = vsel %vm103_vm11, %v87_v4, %v119_v10  ;;  %v68_v21 = vmul.f32 %v225_v13, %v259_v1  ;;  %vm105_vm13 = vcmp.ge.f32.partialorder %v89_v16, 0.0 }
  0x18   :  { %v136_v18 = vsel %vm104_vm12, %v88_v11, %v120_v15  ;;  %v137_v22 = vsel %vm105_vm13, %v89_v16, %v121_v19  ;;  %v122_v23 = vmul.f32 0.2, %v90_v20  ;;  %vm106_vm14 = vcmp.ge.f32.partialorder %v90_v20, 0.0 }
  0x19   :  { %v91_v24 = vadd.f32 %v267_v5, %v68_v21 }
  0x1a   :  { %v138_v25 = vsel %vm106_vm14, %v90_v20, %v122_v23 }
  0x1b   :  { %144 = vxpose.xlu0.b32.cont [5/16] %v128_v38, 128  ;;  %v123_v26 = vmul.f32 0.2, %v91_v24  ;;  %vm107_vm15 = vcmp.ge.f32.partialorder %v91_v24, 0.0 }
  0x1d   :  { %v139_v27 = vsel %vm107_vm15, %v91_v24, %v123_v26 }
  0x1f   :  { %145 = vxpose.xlu0.b32.cont [6/16] %v129_v43, 128 }
  0x23   :  { %146 = vxpose.xlu0.b32.cont [7/16] %v130_v49, 128 }
  0x27   :  { %147 = vxpose.xlu0.b32.cont [8/16] %v131_v54, 128 }
  0x2b   :  { %148 = vxpose.xlu0.b32.cont [9/16] %v132_v60, 128 }
  0x2f   :  { %149 = vxpose.xlu0.b32.cont [10/16] %v133_v2, 128 }
  0x33   :  { %150 = vxpose.xlu0.b32.cont [11/16] %v134_v9, 128 }
  0x37   :  { %151 = vxpose.xlu0.b32.cont [12/16] %v135_v14, 128 }
  0x3b   :  { %152 = vxpose.xlu0.b32.cont [13/16] %v136_v18, 128 }
  0x3f   :  { %153 = vxpose.xlu0.b32.cont [14/16] %v137_v22, 128 }
  0x43   :  { %154 = vxpose.xlu0.b32.cont [15/16] %v138_v25, 128 }
  0x47   :  { %155 = vxpose.xlu0.b32.end [16/16] %v139_v27, 128 }
  0x8b   :  { %v156_v28 = vpop.trf.xlu0 }
  0x8c   :  { %172 = vst [vmem:[%s370_s3] sm:$0xff] %v156_v28 }
  0x8f   :  { %v157_v1 = vpop.trf.xlu0 }
  0x90   :  { %173 = vst [vmem:[%s370_s3 + $0x8] sm:$0xff] %v157_v1 }
  0x93   :  { %v158_v29 = vpop.trf.xlu0 }
  0x94   :  { %174 = vst [vmem:[%s370_s3 + $0x10] sm:$0xff] %v158_v29 }
  0x97   :  { %v159_v5 = vpop.trf.xlu0 }
  0x98   :  { %175 = vst [vmem:[%s370_s3 + $0x18] sm:$0xff] %v159_v5 }
  0x9b   :  { %v160_v30 = vpop.trf.xlu0 }
  0x9c   :  { %176 = vst [vmem:[%s370_s3 + $0x20] sm:$0xff] %v160_v30 }
  0x9f   :  { %v161_v31 = vpop.trf.xlu0 }
  0xa0   :  { %177 = vst [vmem:[%s370_s3 + $0x28] sm:$0xff] %v161_v31 }
  0xa3   :  { %v162_v32 = vpop.trf.xlu0 }
  0xa4   :  { %178 = vst [vmem:[%s370_s3 + $0x30] sm:$0xff] %v162_v32 }
  0xa7   :  { %v163_v33 = vpop.trf.xlu0 }
  0xa8   :  { %179 = vst [vmem:[%s370_s3 + $0x38] sm:$0xff] %v163_v33 }
  0xab   :  { %v164_v34 = vpop.trf.xlu0 }
  0xac   :  { %180 = vst [vmem:[%s370_s3 + $0x40] sm:$0xff] %v164_v34 }
  0xaf   :  { %v165_v35 = vpop.trf.xlu0 }
  0xb0   :  { %181 = vst [vmem:[%s370_s3 + $0x48] sm:$0xff] %v165_v35 }
  0xb3   :  { %v166_v36 = vpop.trf.xlu0 }
  0xb4   :  { %182 = vst [vmem:[%s370_s3 + $0x50] sm:$0xff] %v166_v36 }
  0xb7   :  { %v167_v37 = vpop.trf.xlu0 }
  0xb8   :  { %183 = vst [vmem:[%s370_s3 + $0x58] sm:$0xff] %v167_v37 }
  0xbb   :  { %v168_v38 = vpop.trf.xlu0 }
  0xbc   :  { %184 = vst [vmem:[%s370_s3 + $0x60] sm:$0xff] %v168_v38 }
  0xbf   :  { %v169_v39 = vpop.trf.xlu0 }
  0xc0   :  { %185 = vst [vmem:[%s370_s3 + $0x68] sm:$0xff] %v169_v39 }
  0xc3   :  { %v170_v40 = vpop.trf.xlu0 }
  0xc4   :  { %186 = vst [vmem:[%s370_s3 + $0x70] sm:$0xff] %v170_v40 }
  0xc7   :  { %v171_v41 = vpop.trf.xlu0 }
  0xc8   :  { %187 = vst [vmem:[%s370_s3 + $0x78] sm:$0xff] %v171_v41 }

</bundles_post_ra>
